<compile_context>
chip_gen: v7x
topology: tpu7x:2x2x1
jax: 0.10.0
libtpu: 0.0.40
codegen_flags: <defaults>
</compile_context>

<pallas_src>
import jax
import jax.numpy as jnp
from jax import lax
from jax.experimental import pallas as pl
from jax.experimental.pallas import tpu as pltpu


_NEG_BIG = -1e9  # fill for padded class columns: exp() -> 0 in the LSE, never the max


def _round_up(x, m):
    return (x + m - 1) // m * m


def _cls_head_kernel(cls_ref, w_ref, b_ref, lab_ref, logits_ref, nll_ref):
    """One batch tile: logits = cls @ W + b ; nll = logsumexp(logits) - logits[label].

    cls_ref    : [TB, H]      bf16  CLS activations (batch tile)
    w_ref      : [H, C_pad]   bf16  classifier weight (transposed, class dim padded to 128)
    b_ref      : [1, C_pad]   f32   bias (padded columns hold -1e9)
    lab_ref    : [TB, 1]      i32   class labels (0 for padded rows)
    logits_ref : [TB, C_pad]  f32   logits (lane-dense store)
    nll_ref    : [TB, 1]      f32   per-example negative log-likelihood
    """
    # MXU matmul: bf16 operands, f32 accumulation; bias add in f32.
    logits = jnp.dot(cls_ref[...], w_ref[...],
                     preferred_element_type=jnp.float32) + b_ref[...]
    logits_ref[...] = logits

    # Numerically-stable log-sum-exp; padded class columns are ~-1e9 -> exp == 0.
    m = jnp.max(logits, axis=-1, keepdims=True)                     # [TB, 1]
    lse = m + jnp.log(jnp.sum(jnp.exp(logits - m), axis=-1, keepdims=True))

    # One-hot gather of the target logit (labels only index real columns).
    class_ids = lax.broadcasted_iota(jnp.int32, logits.shape, 1)    # [TB, C_pad]
    onehot = class_ids == lab_ref[...]
    target = jnp.sum(jnp.where(onehot, logits, 0.0), axis=-1, keepdims=True)

    nll_ref[...] = lse - target


def classification_head(last_hidden_state, weight, bias, labels=None,
                        *, batch_tile=128, compute_dtype=jnp.bfloat16):
    """Equivalent of ClassificationModel.forward given the backbone's last hidden state.

    last_hidden_state: [B, S, H] f32
    weight:            [C, H]    f32  (PyTorch nn.Linear layout)
    bias:              [C]       f32
    labels:            [B]       i32 or None
    returns (loss, logits): loss is a scalar (or None if labels is None), logits [B, C].
    """
    B, S, H = last_hidden_state.shape
    C = weight.shape[0]

    # 1) CLS extraction BEFORE the kernel: move only [B, H], not [B, S, H].
    cls = last_hidden_state[:, 0, :]                                 # [B, H]

    # 2) Pad: class dim -> multiple of 128 (lane-dense), batch -> multiple of the tile.
    C_pad = _round_up(C, 128)
    TB = min(batch_tile, _round_up(B, 8))
    B_pad = _round_up(B, TB)

    cls_p = jnp.zeros((B_pad, H), compute_dtype).at[:B].set(cls.astype(compute_dtype))
    w_p = jnp.zeros((H, C_pad), compute_dtype).at[:, :C].set(
        jnp.transpose(weight).astype(compute_dtype))
    b_p = jnp.full((1, C_pad), _NEG_BIG, jnp.float32).at[0, :C].set(
        bias.astype(jnp.float32))
    lab = labels if labels is not None else jnp.zeros((B,), jnp.int32)
    lab_p = jnp.zeros((B_pad, 1), jnp.int32).at[:B, 0].set(lab.astype(jnp.int32))

    grid = (B_pad // TB,)

    # Per-step VMEM footprint (inputs double-buffered by the pipeline) + slack.
    tile_bytes = (TB * H * 2 + H * C_pad * 2 + C_pad * 4
                  + TB * 4 + TB * C_pad * 4 + TB * 4)
    vmem_bytes = int(min(64 * 1024 * 1024, max(4 * 1024 * 1024, 8 * tile_bytes)))

    logits_p, nll_p = pl.pallas_call(
        _cls_head_kernel,
        out_shape=(
            jax.ShapeDtypeStruct((B_pad, C_pad), jnp.float32),
            jax.ShapeDtypeStruct((B_pad, 1), jnp.float32),
        ),
        grid=grid,
        in_specs=[
            pl.BlockSpec((TB, H), lambda i: (i, 0)),       # CLS batch tile
            pl.BlockSpec((H, C_pad), lambda i: (0, 0)),    # weight (resident)
            pl.BlockSpec((1, C_pad), lambda i: (0, 0)),    # bias   (resident)
            pl.BlockSpec((TB, 1), lambda i: (i, 0)),       # labels batch tile
        ],
        out_specs=(
            pl.BlockSpec((TB, C_pad), lambda i: (i, 0)),   # lane-dense logits
            pl.BlockSpec((TB, 1), lambda i: (i, 0)),       # per-example NLL
        ),
        compiler_params=pltpu.CompilerParams(
            dimension_semantics=("parallel",),
            vmem_limit_bytes=vmem_bytes,
        ),
    )(cls_p, w_p, b_p, lab_p)

    logits = logits_p[:B, :C]
    loss = jnp.mean(nll_p[:B, 0]) if labels is not None else None
    return loss, logits


def _reference(last_hidden_state, weight, bias, labels, compute_dtype=jnp.bfloat16):
    # Reference applies the same bf16 operand rounding used inside the kernel.
    cls = last_hidden_state[:, 0, :].astype(compute_dtype).astype(jnp.float32)
    w = weight.astype(compute_dtype).astype(jnp.float32)
    logits = cls @ w.T + bias
    lse = jax.scipy.special.logsumexp(logits, axis=-1)
    tgt = jnp.take_along_axis(logits, labels[:, None], axis=-1)[:, 0]
    return jnp.mean(lse - tgt), logits


if __name__ == "__main__":
    # TODO(synk): the arbitrary HuggingFace `base_model` transformer backbone is
    # not translated; its last hidden state is generated synthetically here.
    B, S, H, C = 2, 8, 32, 4   # batch, seq, hidden_size, num_classes

    key = jax.random.PRNGKey(0)
    k_h, k_w, k_b, k_l = jax.random.split(key, 4)

    last_hidden_state = jax.random.normal(k_h, (B, S, H), dtype=jnp.float32)
    weight = jax.random.normal(k_w, (C, H), dtype=jnp.float32) * (1.0 / jnp.sqrt(H))
    bias = jax.random.normal(k_b, (C,), dtype=jnp.float32) * 0.01
    labels = jax.random.randint(k_l, (B,), 0, C, dtype=jnp.int32)

    loss, logits = jax.jit(classification_head)(last_hidden_state, weight, bias, labels)
    jax.block_until_ready((loss, logits))

    ref_loss, ref_logits = _reference(last_hidden_state, weight, bias, labels)
    assert logits.shape == (B, C), f"bad logits shape {logits.shape}"
    assert jnp.allclose(logits, ref_logits, atol=2e-3, rtol=2e-3), "logits mismatch"
    assert jnp.allclose(loss, ref_loss, atol=2e-3, rtol=2e-3), "loss mismatch"

    print("KERNEL_OK")
</pallas_src>

<mosaic_0001>
module attributes {stable_mosaic.version = 11 : i64} {
  func.func @_cls_head_kernel(%arg0: i32, %arg1: memref<8x32xbf16, #tpu.memory_space<vmem>>, %arg2: memref<32x128xbf16, #tpu.memory_space<vmem>>, %arg3: memref<1x128xf32, #tpu.memory_space<vmem>>, %arg4: memref<8x1xi32, #tpu.memory_space<vmem>>, %arg5: memref<8x128xf32, #tpu.memory_space<vmem>>, %arg6: memref<8x1xf32, #tpu.memory_space<vmem>>) attributes {dimension_semantics = [#tpu.dimension_semantics<parallel>], iteration_bounds = array<i64: 1>, scalar_prefetch = 0 : i64, scratch_operands = 0 : i64, tpu.core_type = #tpu.core_type<tc>, window_params = [{transform_indices = @transform_0, window_bounds = array<i64: 8, 32>}, {pipeline_mode = #tpu.pipeline_mode<synchronous>, transform_indices = @transform_1, window_bounds = array<i64: 32, 128>}, {pipeline_mode = #tpu.pipeline_mode<synchronous>, transform_indices = @transform_2, window_bounds = array<i64: 1, 128>}, {transform_indices = @transform_3, window_bounds = array<i64: 8, 1>}, {transform_indices = @transform_4, window_bounds = array<i64: 8, 128>}, {transform_indices = @transform_5, window_bounds = array<i64: 8, 1>}]} {
    %c0 = arith.constant 0 : index
    %c0_0 = arith.constant 0 : index
    %0 = vector.load %arg1[%c0, %c0_0] : memref<8x32xbf16, #tpu.memory_space<vmem>>, vector<8x32xbf16>
    %c0_1 = arith.constant 0 : index
    %c0_2 = arith.constant 0 : index
    %1 = vector.load %arg2[%c0_1, %c0_2] : memref<32x128xbf16, #tpu.memory_space<vmem>>, vector<32x128xbf16>
    %cst = arith.constant dense<0.000000e+00> : vector<8x128xf32>
    %2 = tpu.matmul %0, %1, %cst {dimension_numbers = #tpu.dot_dimension_numbers<[1], [0], [0], [1], [0, 0, 1, 1], [], []>} : vector<8x32xbf16>, vector<32x128xbf16>, vector<8x128xf32> -> vector<8x128xf32>
    %c0_3 = arith.constant 0 : index
    %c0_4 = arith.constant 0 : index
    %3 = vector.load %arg3[%c0_3, %c0_4] : memref<1x128xf32, #tpu.memory_space<vmem>>, vector<1x128xf32>
    %4 = vector.broadcast %3 : vector<1x128xf32> to vector<8x128xf32>
    %5 = arith.addf %2, %4 : vector<8x128xf32>
    %c0_5 = arith.constant 0 : index
    %c0_6 = arith.constant 0 : index
    %6 = vector.load %arg5[%c0_5, %c0_6] : memref<8x128xf32, #tpu.memory_space<vmem>>, vector<8x128xf32>
    tpu.vector_store %arg5[%c0_5, %c0_6], %5 {strides = array<i32>} : memref<8x128xf32, #tpu.memory_space<vmem>>, vector<8x128xf32>,
    %cst_7 = arith.constant dense<0xFF800000> : vector<8xf32>
    %7 = vector.multi_reduction <maximumf>, %5, %cst_7 [1] : vector<8x128xf32> to vector<8xf32>
    %8 = vector.shape_cast %7 : vector<8xf32> to vector<8x1xf32>
    %9 = vector.broadcast %8 : vector<8x1xf32> to vector<8x128xf32>
    %10 = arith.subf %5, %9 : vector<8x128xf32>
    %11 = math.exp %10 : vector<8x128xf32>
    %cst_8 = arith.constant dense<0.000000e+00> : vector<8xf32>
    %12 = vector.multi_reduction <add>, %11, %cst_8 [1] : vector<8x128xf32> to vector<8xf32>
    %13 = vector.shape_cast %12 : vector<8xf32> to vector<8x1xf32>
    %14 = math.log %13 : vector<8x1xf32>
    %15 = arith.addf %8, %14 : vector<8x1xf32>
    %16 = tpu.iota {dimensions = array<i32: 1>} : vector<8x128xi32>
    %c0_9 = arith.constant 0 : index
    %c0_10 = arith.constant 0 : index
    %17 = vector.load %arg4[%c0_9, %c0_10] : memref<8x1xi32, #tpu.memory_space<vmem>>, vector<8x1xi32>
    %18 = vector.broadcast %17 : vector<8x1xi32> to vector<8x128xi32>
    %19 = arith.cmpi eq, %16, %18 : vector<8x128xi32>
    %cst_11 = arith.constant 0.000000e+00 : f32
    %20 = vector.broadcast %cst_11 : f32 to vector<8x128xf32>
    %21 = arith.select %19, %5, %20 : vector<8x128xi1>, vector<8x128xf32>
    %cst_12 = arith.constant dense<0.000000e+00> : vector<8xf32>
    %22 = vector.multi_reduction <add>, %21, %cst_12 [1] : vector<8x128xf32> to vector<8xf32>
    %23 = vector.shape_cast %22 : vector<8xf32> to vector<8x1xf32>
    %24 = arith.subf %15, %23 : vector<8x1xf32>
    %c0_13 = arith.constant 0 : index
    %c0_14 = arith.constant 0 : index
    %25 = vector.load %arg6[%c0_13, %c0_14] : memref<8x1xf32, #tpu.memory_space<vmem>>, vector<8x1xf32>
    tpu.vector_store %arg6[%c0_13, %c0_14], %24 {strides = array<i32>} : memref<8x1xf32, #tpu.memory_space<vmem>>, vector<8x1xf32>,
    return
  }
  func.func @transform_0(%arg0: i32) -> (i32, i32) {
    %c0_i32 = arith.constant 0 : i32
    %c0_i32_0 = arith.constant 0 : i32
    return %arg0, %c0_i32 : i32, i32
  }
  func.func @transform_1(%arg0: i32) -> (i32, i32) {
    %c0_i32 = arith.constant 0 : i32
    %c0_i32_0 = arith.constant 0 : i32
    %c0_i32_1 = arith.constant 0 : i32
    return %c0_i32, %c0_i32_0 : i32, i32
  }
  func.func @transform_2(%arg0: i32) -> (i32, i32) {
    %c0_i32 = arith.constant 0 : i32
    %c0_i32_0 = arith.constant 0 : i32
    %c0_i32_1 = arith.constant 0 : i32
    return %c0_i32, %c0_i32_0 : i32, i32
  }
  func.func @transform_3(%arg0: i32) -> (i32, i32) {
    %c0_i32 = arith.constant 0 : i32
    %c0_i32_0 = arith.constant 0 : i32
    return %arg0, %c0_i32 : i32, i32
  }
  func.func @transform_4(%arg0: i32) -> (i32, i32) {
    %c0_i32 = arith.constant 0 : i32
    %c0_i32_0 = arith.constant 0 : i32
    return %arg0, %c0_i32 : i32, i32
  }
  func.func @transform_5(%arg0: i32) -> (i32, i32) {
    %c0_i32 = arith.constant 0 : i32
    %c0_i32_0 = arith.constant 0 : i32
    return %arg0, %c0_i32 : i32, i32
  }
}

</mosaic_0001>

<bundles_post_ra>
// kernel: classification_head.1
= control target key start
LH: loop header
LB: loop body
LE: loop exit
PB: predicated region body
PF: predicated region fallthrough
CT: control target
= control target key end

     0   :  { %v145_v0 = vmov 0.0   ;;  %vm146_vm0 = vmmov 0   ;;  %vm44_vm1 = vcmask 261120   ;;  %v147_v4 = vmov 0   ;;  %s199_s1 = inlined_call_operand.vmem [shape: bf16[32,128], index: 1, kind: input, shape index: {}]   ;;  %s200_s0 = inlined_call_operand.vmem [shape: bf16[8,32], index: 0, kind: input, shape index: {}]   ;;  %s201_s2 = inlined_call_operand.vmem [shape: f32[1,128], index: 2, kind: input, shape index: {}]   ;;  %s202_s4 = inlined_call_operand.vmem [shape: f32[8,128], index: 4, kind: output, shape index: {0}]   ;;  %s203_s3 = inlined_call_operand.vmem [shape: s32[8,1], index: 3, kind: input, shape index: {}]   ;;  %s204_s5 = inlined_call_operand.vmem [shape: f32[8,1], index: 5, kind: output, shape index: {1}]  }
   0x1   :  { %127 = vmatprep.subr.bf16.mxu0 %v145_v0  ;;  %v139_v1 = vld [vmem:[%s199_s1] sm:$0xff]   ;;  %131 = vmatprep.mubr.msk.bf16.mxu0 %vm146_vm0, %v145_v0  ;;  %v140_v2 = vld [vmem:[%s199_s1 + $0x8] sm:$0xff]   ;;  %v99_v15 = vlaneseq  ;;  %vm110_vm3 = vcmask 7168  }
   0x2   :  { %128 = vmatpush3.bf16.msra.mxu0 %v139_v1  ;;  %v20_v3 = vld [vmem:[%s200_s0] sm:$0xf]  ;;  %138 = vset.pattern.permute.xlu0 %v147_v4 }
   0x3   :  { %129 = vmatprep.subr.bf16.mxu0 %v145_v0  ;;  %v120_v5 = vld [vmem:[%s201_s2] ss:$0 sm:$0xff]  ;;  %v100_v16 = vand.u32 127, %v99_v15 }
   0x4   :  { %v101_v11 = vld [vmem:[%s203_s3] sm:$0xff] }
   0x6   :  { %130 = vmatpush3.bf16.msra.mxu0 %v140_v2 }
   0x9   :  { %132 = vmatmul.mubr.msk.bf16.vlgmr.msra.gmra.mrb[0].mxu0 %vm44_vm1, %v20_v3 }
  0xdc   :  { %v82_v6 = vpop.f32.mrb[0].mxu0 }
  0xdd   :  { %v83_v7 = vadd.f32 %v120_v5, %v82_v6  ;;  %v133_v8 = vpop.f32.mrb[1].mxu0 }
  0xde   :  { %v85_v9 = vpop.f32.mrb[2].mxu0 }
  0xdf   :  { %88 = vst [vmem:[%s202_s4] sm:$0xff] %v83_v7  ;;  %89 = vmax.xlane.f32.xlu0 %v83_v7  ;;  %v134_v10 = vpop.f32.mrb[3].mxu0 }
  0xf5   :  { %103 = vperm.xlu0 %138, %v101_v11  }
 0x16c   :  { %v90_v12 = vpop.xlane.xlu0 %89 }
 0x16d   :  { %v91_v13 = vsub.f32 %v83_v7, %v90_v12 }
 0x16f   :  { %v92_v14 = vmul.f32 1.442695, %v91_v13 }
 0x171   :  { %141 = vpow2.f32 %v92_v14 }
 0x174   :  { %v104_v17 = vpop.permute.xlu0 %103 }
 0x175   :  { %vm105_vm2 = vcmp.eq.s32.totalorder %v100_v16, %v104_v17 }
 0x176   :  { %v106_v19 = vsel %vm105_vm2, %v83_v7, 0.0 }
 0x17b   :  { %v142_v18 = vpop.eup %141 }
 0x17c   :  { %94 = vadd.xlane.f32.xlu1 %v142_v18 }
 0x180   :  { %107 = vadd.xlane.f32.xlu1 %v106_v19 }
 0x209   :  { %v95_v20 = vpop.xlane.xlu1 %94 }
 0x20a   :  { %143 = vlog2.f32 %v95_v20 }
 0x20d   :  { %v108_v24 = vpop.xlane.xlu1 %107 }
 0x214   :  { %v144_v21 = vpop.eup %143 }
 0x215   :  { %v97_v22 = vmul.f32 0.6931472, %v144_v21 }
 0x217   :  { %v98_v23 = vadd.f32 %v97_v22, %v90_v12 }
 0x219   :  { %v109_v25 = vsub.f32 %v98_v23, %v108_v24 }
 0x21b   :  { %111 = vst.msk [vmem:[%s204_s5] sm:$0xff] %vm110_vm3, %v109_v25 }

</bundles_post_ra>
